<compile_context>
chip_gen: v5e
topology: v5e:2x2
jax: 0.10.0
libtpu: 0.0.40
codegen_flags: <defaults>
</compile_context>

<pallas_src>
import functools
import math

import jax
import jax.numpy as jnp
from jax.experimental import pallas as pl
from jax.experimental.pallas import tpu as pltpu

_LANE = 128  # lane width: pad feature dims to multiples of this


def _round_up(x, m):
    return ((x + m - 1) // m) * m


def _sublane_multiple(dtype):
    """Rows per vreg for this dtype: 8 (32-bit), 16 (bf16), 32 (8-bit)."""
    itemsize = jnp.dtype(dtype).itemsize
    if itemsize >= 4:
        return 8
    if itemsize == 2:
        return 16
    return 32


def _choose_batch_tile(m, sub, tm_max):
    """Pick (padded_batch, batch_tile).

    * tile is a multiple of the dtype-aware sublane pack `sub`
    * minimizes dead padding rows
    * prefers an even number of grid steps (v7x megacore) when it costs nothing
    * prefers bigger tiles to amortize per-grid-step overhead
    """
    mp = _round_up(m, sub)
    if mp <= tm_max:
        # Single tile fits; split in two (for v7x's 2 TCs) only if it stays
        # fully packed and adds zero extra padding.
        if mp >= 2 * sub and mp % (2 * sub) == 0:
            return mp, mp // 2
        return mp, mp
    cands = sorted(
        {c for c in (tm_max, tm_max // 2, 256, 128, sub)
         if sub <= c <= tm_max and c % sub == 0},
        reverse=True,
    )
    best_key, best = None, None
    for tm in cands:
        mp_c = _round_up(m, tm)
        key = (mp_c - m, (mp_c // tm) % 2, -tm)  # waste, odd-grid penalty, -size
        if best_key is None or key < best_key:
            best_key, best = key, (mp_c, tm)
    return best


def _mlp_fused_kernel(*refs, acts, num_layers, compute_dtype, with_pre):
    """Whole-MLP forward on one batch tile.

    refs = (x, w0, b0, ..., w_{L-1}, b_{L-1}, out[, pre]).
    All intermediate activations stay in VMEM / vregs.
    """
    x_ref = refs[0]
    param_refs = refs[1:1 + 2 * num_layers]
    out_ref = refs[1 + 2 * num_layers]
    pre_ref = refs[2 + 2 * num_layers] if with_pre else None

    h = x_ref[...].astype(compute_dtype)

    for i in range(num_layers):
        w = param_refs[2 * i][...]        # (Kp, Np), compute_dtype
        b = param_refs[2 * i + 1][...]    # (1, Np), f32

        y = jnp.dot(h, w, preferred_element_type=jnp.float32)
        y = y + b                          # broadcast over batch rows

        if i < num_layers - 1:
            if acts[i] == "relu":
                y = jnp.maximum(y, 0.0)
            elif acts[i] == "sigmoid":
                y = jax.nn.sigmoid(y)
            else:
                raise ValueError(f"unsupported activation: {acts[i]}")
            if with_pre and i == num_layers - 2:
                pre_ref[...] = y.astype(pre_ref.dtype)
            h = y.astype(compute_dtype)
        else:
            out_ref[...] = y.astype(out_ref.dtype)


def _vmem_capacity_bytes():
    try:
        return int(pltpu.get_tpu_info().vmem_capacity_bytes)
    except Exception:
        return 128 << 20  # conservative upper bound; limit below physical is enforced at alloc


def _mlp_forward_pallas(x, padded_params, *, acts, padded_sizes, compute_dtype,
                        want_pre):
    """Run the fused MLP kernel.  Returns padded `out` (and padded `pre` if requested)."""
    m, k = x.shape
    num_layers = len(padded_params)
    k0p = padded_sizes[0]
    n_pre_p = padded_sizes[-2]
    n_out_p = padded_sizes[-1]
    with_pre = want_pre and num_layers > 1

    # Batch tiling: dtype-aware sublane rounding, minimal padding, big tiles
    # when the feature widths are small (amortize per-step overhead).
    sub = _sublane_multiple(compute_dtype)
    max_np = max(padded_sizes)
    tm_max = 1024 if max_np <= 256 else (512 if max_np <= 512 else 256)
    mp, tm = _choose_batch_tile(m, sub, tm_max)
    grid_m = mp // tm

    # Zero-pad batch rows / input features (cast happens inside the kernel).
    # allow_input_fusion lets XLA fuse this pad into the pallas_call instead of
    # materializing a second copy of x in HBM.
    if mp != m or k0p != k:
        xp = jnp.pad(x, ((0, mp - m), (0, k0p - k)))
    else:
        xp = x

    in_specs = [pl.BlockSpec((tm, k0p), lambda i: (i, 0))]
    flat_params = []
    for wp, bp in padded_params:
        kp, np_ = wp.shape
        # Grid-invariant blocks: same block every step, single-buffered so the
        # weights/bias stay resident in VMEM with no 2x buffer overhead.
        in_specs.append(
            pl.BlockSpec((kp, np_), lambda i: (0, 0), pipeline_mode=pl.Buffered(1)))
        in_specs.append(
            pl.BlockSpec((1, np_), lambda i: (0, 0), pipeline_mode=pl.Buffered(1)))
        flat_params += [wp, bp]

    out_shape = [jax.ShapeDtypeStruct((mp, n_out_p), x.dtype)]
    out_specs = [pl.BlockSpec((tm, n_out_p), lambda i: (i, 0))]
    if with_pre:
        out_shape.append(jax.ShapeDtypeStruct((mp, n_pre_p), x.dtype))
        out_specs.append(pl.BlockSpec((tm, n_pre_p), lambda i: (i, 0)))

    # Explicit VMEM budget from the resident footprint (+ headroom), so the
    # default scoped limit never bites and we stay below physical capacity.
    x_item = jnp.dtype(x.dtype).itemsize
    out_item = jnp.dtype(x.dtype).itemsize
    resident = 2 * tm * k0p * x_item                              # input block (double-buffered)
    resident += sum(w.size * w.dtype.itemsize + b.size * b.dtype.itemsize
                    for w, b in padded_params)                    # single-buffered params
    resident += 2 * tm * n_out_p * out_item                       # output block
    if with_pre:
        resident += 2 * tm * n_pre_p * out_item
    resident += 4 * tm * max_np * 4                               # f32 temporaries headroom
    vmem_limit = int(min(max(resident + (4 << 20), 32 << 20), _vmem_capacity_bytes()))

    # Advisory cost estimate so XLA schedules the custom call sensibly.
    flops = 2 * mp * sum(padded_sizes[i] * padded_sizes[i + 1] for i in range(num_layers))
    transcendentals = mp * sum(
        padded_sizes[i + 1] for i in range(num_layers - 1) if acts[i] == "sigmoid")
    bytes_accessed = (
        xp.size * x_item
        + sum(w.size * w.dtype.itemsize + b.size * b.dtype.itemsize
              for w, b in padded_params)
        + sum(math.prod(s.shape) * jnp.dtype(s.dtype).itemsize for s in out_shape))

    kernel = functools.partial(
        _mlp_fused_kernel,
        acts=tuple(acts),
        num_layers=num_layers,
        compute_dtype=compute_dtype,
        with_pre=with_pre,
    )

    # TODO(synk): for production-size layers whose resident weights exceed the
    # per-core VMEM budget (notably v7x: 64 MiB/TC), add a K/N-tiled fallback
    # (grid=(M//tm, N//tn, K//tk) + f32 accumulator scratch) instead of
    # whole-array weight blocks.

    outs = pl.pallas_call(
        kernel,
        out_shape=tuple(out_shape),
        grid=(grid_m,),
        in_specs=in_specs,
        out_specs=tuple(out_specs),
        compiler_params=pltpu.CompilerParams(
            # Batch tiles shard across the two TensorCores on v7x; with
            # Buffered(1) + grid-invariant index maps the weight blocks are
            # not re-DMA'd per batch tile.
            dimension_semantics=("parallel",),
            vmem_limit_bytes=vmem_limit,
            allow_input_fusion=[True] + [False] * (2 * num_layers),
        ),
        cost_estimate=pl.CostEstimate(
            flops=flops,
            transcendentals=transcendentals,
            bytes_accessed=bytes_accessed,
        ),
    )(xp, *flat_params)

    if with_pre:
        return outs[0], outs[1]
    return outs[0], None


class MLPPallas:
    """JAX/Pallas port of the PyTorch MLP module.

    sizes: list of layer widths; acts: activations for the hidden layers
    (len(sizes) == len(acts) + 2).  The output layer has no activation,
    matching the PyTorch reference.  The whole forward pass is a single fused
    Pallas kernel; the pre-activation output is only produced when requested.

    Note: with compute_dtype=bf16 the kernel uses bf16 weights/activations on
    the MXU with f32 accumulation -- accuracy is bounded by the bf16 cast.
    """

    def __init__(self, sizes, acts, key, compute_dtype=jnp.bfloat16):
        if len(sizes) != len(acts) + 2:
            raise ValueError(
                f"length of sizes ({len(sizes)}) and activations "
                f"({len(acts)}) are incompatible")
        for a in acts:
            if a not in ("relu", "sigmoid"):
                raise ValueError(
                    f"{a} activation layer hasn't been implemented in this code")
        self.sizes = list(sizes)
        self.acts = list(acts)
        self.num_layers = len(sizes) - 1
        self.compute_dtype = compute_dtype
        # Feature dims padded to lane multiples for lane-dense MXU / stores.
        # (128 fully feeds v5e's MXU; on v6e/v7x 128-wide layers use ~50% of
        # MXU depth -- widths that are multiples of 256 would use it fully.)
        self.padded_sizes = [_round_up(s, _LANE) for s in self.sizes]

        self.params = []          # un-padded f32 params (reference / export)
        self.padded_params = []   # (w [Kp,Np] compute_dtype, b [1,Np] f32)
        for i in range(self.num_layers):
            fan_in, fan_out = sizes[i], sizes[i + 1]
            key, wk, bk = jax.random.split(key, 3)
            bound = 1.0 / math.sqrt(fan_in)
            w = jax.random.uniform(
                wk, (fan_in, fan_out), jnp.float32, minval=-bound, maxval=bound)
            b = jax.random.uniform(
                bk, (fan_out,), jnp.float32, minval=-bound, maxval=bound)
            self.params.append((w, b))

            kp, np_ = self.padded_sizes[i], self.padded_sizes[i + 1]
            wp = (jnp.zeros((kp, np_), compute_dtype)
                  .at[:fan_in, :fan_out].set(w.astype(compute_dtype)))
            bp = jnp.zeros((1, np_), jnp.float32).at[0, :fan_out].set(b)
            self.padded_params.append((wp, bp))

    def __call__(self, x, return_preactivations=False):
        m, k = x.shape
        if k != self.sizes[0]:
            raise ValueError(f"expected input features {self.sizes[0]}, got {k}")

        out_p, pre_p = _mlp_forward_pallas(
            x,
            self.padded_params,
            acts=self.acts,
            padded_sizes=self.padded_sizes,
            compute_dtype=self.compute_dtype,
            want_pre=return_preactivations,
        )
        o = out_p[:m, : self.sizes[-1]]
        if not return_preactivations:
            return o
        if self.num_layers == 1:
            return o, x
        return o, pre_p[:m, : self.sizes[-2]]


if __name__ == "__main__":
    key = jax.random.PRNGKey(0)
    key, xk, pk = jax.random.split(key, 3)

    # Small example config: MLP with sizes [32, 64, 48, 16], acts ['relu','sigmoid']
    sizes = [32, 64, 48, 16]
    acts = ["relu", "sigmoid"]
    batch = 8

    x = jax.random.normal(xk, (batch, sizes[0]), jnp.float32)

    # Plain-JAX reference (built from the same f32 params).
    mlp_f32 = MLPPallas(sizes, acts, pk, compute_dtype=jnp.float32)
    h = x
    for i in range(mlp_f32.num_layers - 1):
        w, b = mlp_f32.params[i]
        h = h @ w + b
        h = jnp.maximum(h, 0.0) if acts[i] == "relu" else jax.nn.sigmoid(h)
    pre_ref = h
    w, b = mlp_f32.params[-1]
    ref = h @ w + b

    # --- f32 compute path: exact check (with and without pre-activations) ---
    out_only = mlp_f32(x, return_preactivations=False)   # no-pre kernel variant
    jax.block_until_ready(out_only)
    assert out_only.shape == (batch, sizes[-1])
    assert jnp.allclose(out_only, ref, atol=1e-5, rtol=1e-5)

    out, pre = mlp_f32(x, return_preactivations=True)     # with-pre kernel variant
    jax.block_until_ready(out)
    jax.block_until_ready(pre)
    assert out.shape == (batch, sizes[-1])
    assert pre.shape == (batch, sizes[-2])
    assert jnp.allclose(out, ref, atol=1e-5, rtol=1e-5)
    assert jnp.allclose(pre, pre_ref, atol=1e-5, rtol=1e-5)

    # --- bf16 compute path (bf16 MXU matmul, f32 accumulation): loose check ---
    mlp_bf16 = MLPPallas(sizes, acts, pk, compute_dtype=jnp.bfloat16)
    out_bf16 = mlp_bf16(x)
    jax.block_until_ready(out_bf16)
    assert out_bf16.shape == (batch, sizes[-1])
    assert jnp.allclose(out_bf16, ref, atol=5e-2, rtol=5e-2)

    print("KERNEL_OK")
</pallas_src>

<mosaic_0001>
module attributes {stable_mosaic.version = 11 : i64} {
  func.func @_mlp_fused_kernel(%arg0: i32, %arg1: memref<8x128xf32, #tpu.memory_space<vmem>>, %arg2: memref<128x128xf32, #tpu.memory_space<vmem>>, %arg3: memref<1x128xf32, #tpu.memory_space<vmem>>, %arg4: memref<128x128xf32, #tpu.memory_space<vmem>>, %arg5: memref<1x128xf32, #tpu.memory_space<vmem>>, %arg6: memref<128x128xf32, #tpu.memory_space<vmem>>, %arg7: memref<1x128xf32, #tpu.memory_space<vmem>>, %arg8: memref<8x128xf32, #tpu.memory_space<vmem>>) attributes {dimension_semantics = [#tpu.dimension_semantics<parallel>], iteration_bounds = array<i64: 1>, scalar_prefetch = 0 : i64, scratch_operands = 0 : i64, tpu.core_type = #tpu.core_type<tc>, window_params = [{transform_indices = @transform_0, window_bounds = array<i64: 8, 128>}, {pipeline_mode = #tpu.pipeline_mode<synchronous>, transform_indices = @transform_1, window_bounds = array<i64: 128, 128>}, {pipeline_mode = #tpu.pipeline_mode<synchronous>, transform_indices = @transform_2, window_bounds = array<i64: 1, 128>}, {pipeline_mode = #tpu.pipeline_mode<synchronous>, transform_indices = @transform_3, window_bounds = array<i64: 128, 128>}, {pipeline_mode = #tpu.pipeline_mode<synchronous>, transform_indices = @transform_4, window_bounds = array<i64: 1, 128>}, {pipeline_mode = #tpu.pipeline_mode<synchronous>, transform_indices = @transform_5, window_bounds = array<i64: 128, 128>}, {pipeline_mode = #tpu.pipeline_mode<synchronous>, transform_indices = @transform_6, window_bounds = array<i64: 1, 128>}, {transform_indices = @transform_7, window_bounds = array<i64: 8, 128>}]} {
    %c0 = arith.constant 0 : index
    %c0_0 = arith.constant 0 : index
    %0 = vector.load %arg1[%c0, %c0_0] : memref<8x128xf32, #tpu.memory_space<vmem>>, vector<8x128xf32>
    %c0_1 = arith.constant 0 : index
    %c0_2 = arith.constant 0 : index
    %1 = vector.load %arg2[%c0_1, %c0_2] : memref<128x128xf32, #tpu.memory_space<vmem>>, vector<128x128xf32>
    %c0_3 = arith.constant 0 : index
    %c0_4 = arith.constant 0 : index
    %2 = vector.load %arg3[%c0_3, %c0_4] : memref<1x128xf32, #tpu.memory_space<vmem>>, vector<1x128xf32>
    %cst = arith.constant dense<0.000000e+00> : vector<8x128xf32>
    %3 = tpu.matmul %0, %1, %cst {dimension_numbers = #tpu.dot_dimension_numbers<[1], [0], [0], [1], [0, 0, 1, 1], [], []>} : vector<8x128xf32>, vector<128x128xf32>, vector<8x128xf32> -> vector<8x128xf32>
    %4 = vector.broadcast %2 : vector<1x128xf32> to vector<8x128xf32>
    %5 = arith.addf %3, %4 : vector<8x128xf32>
    %cst_5 = arith.constant 0.000000e+00 : f32
    %6 = vector.broadcast %cst_5 : f32 to vector<8x128xf32>
    %7 = arith.maximumf %5, %6 : vector<8x128xf32>
    %c0_6 = arith.constant 0 : index
    %c0_7 = arith.constant 0 : index
    %8 = vector.load %arg4[%c0_6, %c0_7] : memref<128x128xf32, #tpu.memory_space<vmem>>, vector<128x128xf32>
    %c0_8 = arith.constant 0 : index
    %c0_9 = arith.constant 0 : index
    %9 = vector.load %arg5[%c0_8, %c0_9] : memref<1x128xf32, #tpu.memory_space<vmem>>, vector<1x128xf32>
    %cst_10 = arith.constant dense<0.000000e+00> : vector<8x128xf32>
    %10 = tpu.matmul %7, %8, %cst_10 {dimension_numbers = #tpu.dot_dimension_numbers<[1], [0], [0], [1], [0, 0, 1, 1], [], []>} : vector<8x128xf32>, vector<128x128xf32>, vector<8x128xf32> -> vector<8x128xf32>
    %11 = vector.broadcast %9 : vector<1x128xf32> to vector<8x128xf32>
    %12 = arith.addf %10, %11 : vector<8x128xf32>
    %13 = arith.negf %12 : vector<8x128xf32>
    %14 = math.exp %13 : vector<8x128xf32>
    %cst_11 = arith.constant 1.000000e+00 : f32
    %15 = vector.broadcast %cst_11 : f32 to vector<8x128xf32>
    %16 = arith.addf %15, %14 : vector<8x128xf32>
    %17 = arith.divf %15, %16 : vector<8x128xf32>
    %c0_12 = arith.constant 0 : index
    %c0_13 = arith.constant 0 : index
    %18 = vector.load %arg6[%c0_12, %c0_13] : memref<128x128xf32, #tpu.memory_space<vmem>>, vector<128x128xf32>
    %c0_14 = arith.constant 0 : index
    %c0_15 = arith.constant 0 : index
    %19 = vector.load %arg7[%c0_14, %c0_15] : memref<1x128xf32, #tpu.memory_space<vmem>>, vector<1x128xf32>
    %cst_16 = arith.constant dense<0.000000e+00> : vector<8x128xf32>
    %20 = tpu.matmul %17, %18, %cst_16 {dimension_numbers = #tpu.dot_dimension_numbers<[1], [0], [0], [1], [0, 0, 1, 1], [], []>} : vector<8x128xf32>, vector<128x128xf32>, vector<8x128xf32> -> vector<8x128xf32>
    %21 = vector.broadcast %19 : vector<1x128xf32> to vector<8x128xf32>
    %22 = arith.addf %20, %21 : vector<8x128xf32>
    %c0_17 = arith.constant 0 : index
    %c0_18 = arith.constant 0 : index
    %23 = vector.load %arg8[%c0_17, %c0_18] : memref<8x128xf32, #tpu.memory_space<vmem>>, vector<8x128xf32>
    tpu.vector_store %arg8[%c0_17, %c0_18], %22 {strides = array<i32>} : memref<8x128xf32, #tpu.memory_space<vmem>>, vector<8x128xf32>,
    return
  }
  func.func @transform_0(%arg0: i32) -> (i32, i32) {
    %c0_i32 = arith.constant 0 : i32
    %c0_i32_0 = arith.constant 0 : i32
    return %arg0, %c0_i32 : i32, i32
  }
  func.func @transform_1(%arg0: i32) -> (i32, i32) {
    %c0_i32 = arith.constant 0 : i32
    %c0_i32_0 = arith.constant 0 : i32
    %c0_i32_1 = arith.constant 0 : i32
    return %c0_i32, %c0_i32_0 : i32, i32
  }
  func.func @transform_2(%arg0: i32) -> (i32, i32) {
    %c0_i32 = arith.constant 0 : i32
    %c0_i32_0 = arith.constant 0 : i32
    %c0_i32_1 = arith.constant 0 : i32
    return %c0_i32, %c0_i32_0 : i32, i32
  }
  func.func @transform_3(%arg0: i32) -> (i32, i32) {
    %c0_i32 = arith.constant 0 : i32
    %c0_i32_0 = arith.constant 0 : i32
    %c0_i32_1 = arith.constant 0 : i32
    return %c0_i32, %c0_i32_0 : i32, i32
  }
  func.func @transform_4(%arg0: i32) -> (i32, i32) {
    %c0_i32 = arith.constant 0 : i32
    %c0_i32_0 = arith.constant 0 : i32
    %c0_i32_1 = arith.constant 0 : i32
    return %c0_i32, %c0_i32_0 : i32, i32
  }
  func.func @transform_5(%arg0: i32) -> (i32, i32) {
    %c0_i32 = arith.constant 0 : i32
    %c0_i32_0 = arith.constant 0 : i32
    %c0_i32_1 = arith.constant 0 : i32
    return %c0_i32, %c0_i32_0 : i32, i32
  }
  func.func @transform_6(%arg0: i32) -> (i32, i32) {
    %c0_i32 = arith.constant 0 : i32
    %c0_i32_0 = arith.constant 0 : i32
    %c0_i32_1 = arith.constant 0 : i32
    return %c0_i32, %c0_i32_0 : i32, i32
  }
  func.func @transform_7(%arg0: i32) -> (i32, i32) {
    %c0_i32 = arith.constant 0 : i32
    %c0_i32_0 = arith.constant 0 : i32
    return %arg0, %c0_i32 : i32, i32
  }
}

</mosaic_0001>

<bundles_post_ra>
// kernel: tpu_custom_call.1
= control target key start
LH: loop header
LB: loop body
LE: loop exit
PB: predicated region body
PF: predicated region fallthrough
CT: control target
= control target key end

     0   :  { %12 = vsyncpa [#allocation3], 0  ;;  %s463_s0 = inlined_call_operand.hbm [shape: f32[8,128], index: 0, kind: input, shape index: {}]   ;;  %s464_s1 = inlined_call_operand.hbm [shape: f32[128,128], index: 1, kind: input, shape index: {}]   ;;  %s465_s2 = inlined_call_operand.vmem [shape: f32[1,128], index: 2, kind: input, shape index: {}]   ;;  %s466_s3 = inlined_call_operand.hbm [shape: f32[128,128], index: 3, kind: input, shape index: {}]   ;;  %s467_s4 = inlined_call_operand.vmem [shape: f32[1,128], index: 4, kind: input, shape index: {}]   ;;  %s468_s5 = inlined_call_operand.hbm [shape: f32[128,128], index: 5, kind: input, shape index: {}]   ;;  %s469_s6 = inlined_call_operand.vmem [shape: f32[1,128], index: 6, kind: input, shape index: {}]   ;;  %s470_s7 = inlined_call_operand.hbm [shape: f32[8,128], index: 7, kind: output, shape index: {}]  }
   0x1   :  { %13 = vsyncpa [#allocation6], 0 }
   0x2   :  { %14 = vsyncpa [#allocation9], 0  ;;  %s31_s26 = sshll.u32 %s464_s1, 4  ;;  %s32_s26 = int_to_ptr.hbm [resolvable:$true] %s31_s26 }
   0x3   :  { %15 = vsyncpa [#allocation4], 0  ;;  %s392_s27 = smov [#allocation5]   ;;  %s21_s8 = sshll.u32 %s463_s0, 4  ;;  %s22_s8 = int_to_ptr.hbm [resolvable:$true] %s21_s8 }
   0x4   :  { %s33_s28 = sshll.u32 %s392_s27, 4  ;;  %s393_s9 = smov 128   ;;  %s34_s28 = int_to_ptr.vmem [resolvable:$true] %s33_s28 }
   0x5   :  { %s394_s10 = smov 8   ;;  %s395_s11 = smov [#allocation2]  }
   0x6   :  { %39 = dma.hbm_to_vmem [thread:$0]  %s32_s26, 2048, %s34_s28, [#allocation6], %s393_s9, %s393_s9, %s394_s10  }
   0x7   :  { %s23_s12 = sshll.u32 %s395_s11, 4  ;;  %s46_s15 = sshll.u32 %s466_s3, 4  ;;  %s24_s12 = int_to_ptr.vmem [resolvable:$true] %s23_s12  ;;  %s47_s15 = int_to_ptr.hbm [resolvable:$true] %s46_s15 }
   0x8   :  { %26 = dma.hbm_to_vmem [thread:$0]  %s22_s8, 128, %s24_s12, [#allocation3]  }
   0x9   :  { %s61_s17 = sshll.u32 %s468_s5, 4  ;;  %s396_s18 = smov [#allocation7]   ;;  %s62_s17 = int_to_ptr.hbm [resolvable:$true] %s61_s17 }
   0xa   :  { %s48_s19 = sshll.u32 %s396_s18, 4  ;;  %s397_s0 = smov [#allocation8]   ;;  %s49_s19 = int_to_ptr.vmem [resolvable:$true] %s48_s19 }
   0xb   :  { %54 = dma.hbm_to_vmem [thread:$0]  %s47_s15, 2048, %s49_s19, [#allocation6], %s393_s9, %s393_s9, %s394_s10  }
   0xc   :  { %s63_s20 = sshll.u32 %s397_s0, 4  ;;  %s64_s20 = int_to_ptr.vmem [resolvable:$true] %s63_s20 }
   0xd   :  { %69 = dma.hbm_to_vmem [thread:$0]  %s62_s17, 2048, %s64_s20, [#allocation9], %s393_s9, %s393_s9, %s394_s10  }
   0xe   :  { %384 = dma.done.wait [#allocation3], 128  }
   0xf   :  { %385 = vsyncadd [#allocation3], 4294967168 }
  0x10   :  { %386 = dma.done.wait [#allocation6], 4096  }
  0x11   :  { %387 = vsyncadd [#allocation6], 4294963200 }
  0x12   :  { %388 = dma.done.wait [#allocation9], 2048  }
  0x13   :  { %389 = vsyncadd [#allocation9], 4294965248  ;;  %v104_v0 = vld [vmem:[#allocation5 + $0x78] sm:$0xff]  ;;  %v103_v1 = vld [vmem:[#allocation5 + $0x70] sm:$0xff]  ;;  %s398_s23 = smov [#allocation10]   ;;  %s237_s27 = sshll.u32 %s470_s7, 4  ;;  %s238_s27 = int_to_ptr.hbm [resolvable:$true] %s237_s27 }
  0x14   :  { %109 = vmatpush.msra.mxu0 %v104_v0  ;;  %v102_v2 = vld [vmem:[#allocation5 + $0x68] sm:$0xff]  ;;  %v101_v3 = vld [vmem:[#allocation5 + $0x60] sm:$0xff]  ;;  %v145_v4 = vld [vmem:[#allocation7 + $0x78] sm:$0xff]  ;;  %s235_s24 = sshll.u32 %s398_s23, 4  ;;  %s236_s24 = int_to_ptr.vmem [resolvable:$true] %s235_s24 }
  0x15   :  { %v100_v5 = vld [vmem:[#allocation5 + $0x58] sm:$0xff]  ;;  %150 = vmatpush.msra.mxu1 %v145_v4  ;;  %v144_v6 = vld [vmem:[#allocation7 + $0x70] sm:$0xff]  ;;  %v143_v7 = vld [vmem:[#allocation7 + $0x68] sm:$0xff] }
  0x16   :  { %110 = vmatpush.msra.mxu0 %v103_v1  ;;  %v99_v8 = vld [vmem:[#allocation5 + $0x50] sm:$0xff]  ;;  %v142_v9 = vld [vmem:[#allocation7 + $0x60] sm:$0xff]  ;;  %v98_v10 = vld [vmem:[#allocation5 + $0x48] sm:$0xff] }
  0x17   :  { %151 = vmatpush.msra.mxu1 %v144_v6  ;;  %v141_v11 = vld [vmem:[#allocation7 + $0x58] sm:$0xff]  ;;  %v97_v12 = vld [vmem:[#allocation5 + $0x40] sm:$0xff]  ;;  %v140_v13 = vld [vmem:[#allocation7 + $0x50] sm:$0xff] }
  0x18   :  { %111 = vmatpush.msra.mxu0 %v102_v2  ;;  %v96_v14 = vld [vmem:[#allocation5 + $0x38] sm:$0xff]  ;;  %v139_v15 = vld [vmem:[#allocation7 + $0x48] sm:$0xff]  ;;  %v95_v16 = vld [vmem:[#allocation5 + $0x30] sm:$0xff] }
  0x19   :  { %152 = vmatpush.msra.mxu1 %v143_v7  ;;  %v138_v17 = vld [vmem:[#allocation7 + $0x40] sm:$0xff]  ;;  %v94_v18 = vld [vmem:[#allocation5 + $0x28] sm:$0xff]  ;;  %v137_v19 = vld [vmem:[#allocation7 + $0x38] sm:$0xff] }
  0x1a   :  { %112 = vmatpush.msra.mxu0 %v101_v3  ;;  %v93_v20 = vld [vmem:[#allocation5 + $0x20] sm:$0xff]  ;;  %v136_v21 = vld [vmem:[#allocation7 + $0x30] sm:$0xff]  ;;  %v92_v22 = vld [vmem:[#allocation5 + $0x18] sm:$0xff] }
  0x1b   :  { %153 = vmatpush.msra.mxu1 %v142_v9  ;;  %v135_v23 = vld [vmem:[#allocation7 + $0x28] sm:$0xff]  ;;  %v91_v24 = vld [vmem:[#allocation5 + $0x10] sm:$0xff]  ;;  %v134_v25 = vld [vmem:[#allocation7 + $0x20] sm:$0xff] }
  0x1c   :  { %113 = vmatpush.msra.mxu0 %v100_v5  ;;  %v90_v26 = vld [vmem:[#allocation5 + $0x8] sm:$0xff]  ;;  %v133_v27 = vld [vmem:[#allocation7 + $0x18] sm:$0xff]  ;;  %v89_v28 = vld [vmem:[#allocation5] sm:$0xff] }
  0x1d   :  { %154 = vmatpush.msra.mxu1 %v141_v11  ;;  %v88_v29 = vld [vmem:[#allocation2] sm:$0xff]  ;;  %v132_v30 = vld [vmem:[#allocation7 + $0x10] sm:$0xff]  ;;  %v131_v31 = vld [vmem:[#allocation7 + $0x8] sm:$0xff] }
  0x1e   :  { %114 = vmatpush.msra.mxu0 %v99_v8  ;;  %v130_v32 = vld [vmem:[#allocation7] sm:$0xff]  ;;  %v257_v33 = vld [vmem:[%s465_s2] ss:$0 sm:$0xff]  ;;  %v203_v38 = vld [vmem:[#allocation8 + $0x70] sm:$0xff] }
  0x1f   :  { %155 = vmatpush.msra.mxu1 %v140_v13  ;;  %v204_v37 = vld [vmem:[#allocation8 + $0x78] sm:$0xff]  ;;  %v202_v39 = vld [vmem:[#allocation8 + $0x68] sm:$0xff]  ;;  %v201_v40 = vld [vmem:[#allocation8 + $0x60] sm:$0xff] }
  0x20   :  { %115 = vmatpush.msra.mxu0 %v98_v10  ;;  %209 = vmatpush.msra.mxu2 %v204_v37  ;;  %v200_v41 = vld [vmem:[#allocation8 + $0x58] sm:$0xff]  ;;  %v199_v42 = vld [vmem:[#allocation8 + $0x50] sm:$0xff]  ;;  %v198_v43 = vld [vmem:[#allocation8 + $0x48] sm:$0xff] }
  0x21   :  { %156 = vmatpush.msra.mxu1 %v139_v15  ;;  %v197_v44 = vld [vmem:[#allocation8 + $0x40] sm:$0xff]  ;;  %v196_v45 = vld [vmem:[#allocation8 + $0x38] sm:$0xff]  ;;  %v195_v46 = vld [vmem:[#allocation8 + $0x30] sm:$0xff] }
  0x22   :  { %116 = vmatpush.msra.mxu0 %v97_v12  ;;  %210 = vmatpush.msra.mxu2 %v203_v38  ;;  %v194_v47 = vld [vmem:[#allocation8 + $0x28] sm:$0xff]  ;;  %v193_v48 = vld [vmem:[#allocation8 + $0x20] sm:$0xff]  ;;  %v192_v49 = vld [vmem:[#allocation8 + $0x18] sm:$0xff] }
  0x23   :  { %157 = vmatpush.msra.mxu1 %v138_v17  ;;  %v191_v50 = vld [vmem:[#allocation8 + $0x10] sm:$0xff]  ;;  %v190_v51 = vld [vmem:[#allocation8 + $0x8] sm:$0xff]  ;;  %v189_v52 = vld [vmem:[#allocation8] sm:$0xff] }
  0x24   :  { %117 = vmatpush.msra.mxu0 %v96_v14  ;;  %211 = vmatpush.msra.mxu2 %v202_v39  ;;  %v258_v53 = vld [vmem:[%s467_s4] ss:$0 sm:$0xff] }
  0x25   :  { %158 = vmatpush.msra.mxu1 %v137_v19  ;;  %v259_v5 = vld [vmem:[%s469_s6] ss:$0 sm:$0xff] }
  0x26   :  { %118 = vmatpush.msra.mxu0 %v95_v16  ;;  %212 = vmatpush.msra.mxu2 %v201_v40 }
  0x27   :  { %159 = vmatpush.msra.mxu1 %v136_v21 }
  0x28   :  { %119 = vmatpush.msra.mxu0 %v94_v18  ;;  %213 = vmatpush.msra.mxu2 %v200_v41 }
  0x29   :  { %160 = vmatpush.msra.mxu1 %v135_v23 }
  0x2a   :  { %120 = vmatpush.msra.mxu0 %v93_v20  ;;  %214 = vmatpush.msra.mxu2 %v199_v42 }
  0x2b   :  { %161 = vmatpush.msra.mxu1 %v134_v25 }
  0x2c   :  { %121 = vmatpush.msra.mxu0 %v92_v22  ;;  %215 = vmatpush.msra.mxu2 %v198_v43 }
  0x2d   :  { %162 = vmatpush.msra.mxu1 %v133_v27 }
  0x2e   :  { %122 = vmatpush.msra.mxu0 %v91_v24  ;;  %216 = vmatpush.msra.mxu2 %v197_v44 }
  0x2f   :  { %163 = vmatpush.msra.mxu1 %v132_v30 }
  0x30   :  { %123 = vmatpush.msra.mxu0 %v90_v26  ;;  %217 = vmatpush.msra.mxu2 %v196_v45 }
  0x31   :  { %164 = vmatpush.msra.mxu1 %v131_v31 }
  0x32   :  { %124 = vmatpush.msra.mxu0 %v89_v28  ;;  %218 = vmatpush.msra.mxu2 %v195_v46 }
  0x33   :  { %125 = vmatmul.f32.vlgmr.msra.gmra.mxu0 %v88_v29  ;;  %165 = vmatpush.msra.mxu1 %v130_v32 }
  0x34   :  { %219 = vmatpush.msra.mxu2 %v194_v47 }
  0x36   :  { %220 = vmatpush.msra.mxu2 %v193_v48 }
  0x38   :  { %221 = vmatpush.msra.mxu2 %v192_v49 }
  0x3a   :  { %222 = vmatpush.msra.mxu2 %v191_v50 }
  0x3c   :  { %223 = vmatpush.msra.mxu2 %v190_v51 }
  0x3e   :  { %224 = vmatpush.msra.mxu2 %v189_v52 }
  0xb0   :  { %v126_v34 = vpop.f32.mrf.mxu0 }
  0xb1   :  { %v127_v35 = vadd.f32 %v257_v33, %v126_v34 }
  0xb3   :  { %v129_v36 = vmax.f32 %v127_v35, 0.0 }
  0xb5   :  { %166 = vmatmul.f32.vlgmr.msra.gmra.mxu1 %v129_v36 }
 0x132   :  { %v167_v54 = vpop.f32.mrf.mxu1 }
 0x133   :  { %v168_v55 = vadd.f32 %v258_v53, %v167_v54 }
 0x135   :  { %v249_v56 = vmul.f32 -1.442695, %v168_v55 }
 0x137   :  { %260 = vpow2.f32 %v249_v56 }
 0x13d   :  { %v261_v57 = vpop.eup %260 }
 0x13e   :  { %v173_v58 = vadd.f32 1.0, %v261_v57 }
 0x140   :  { %262 = vrcp.f32 %v173_v58  ;;  %v185_v62 = vand.u32 2147483648, %v173_v58  ;;  %v183_v0 = vand.u32 2147483647, %v173_v58  ;;  %vm179_vm1 = vweird.f32 %v173_v58 }
 0x142   :  { %v186_v2 = vor.u32 1.1754944e-38, %v185_v62  ;;  %vm184_vm3 = vcmp.eq.f32.partialorder %v183_v0, 8.507059e+37 }
 0x146   :  { %v263_v59 = vpop.eup %262 }
 0x147   :  { %v175_v60 = vmul.f32 %v263_v59, %v173_v58  ;;  %vm180_vm0 = vweird.f32 %v263_v59 }
 0x148   :  { %vm181_vm2 = vmor %vm179_vm1, %vm180_vm0 }
 0x149   :  { %v176_v61 = vsub.f32 1.0, %v175_v60 }
 0x14b   :  { %v177_v63 = vmul.f32 %v263_v59, %v176_v61 }
 0x14d   :  { %v178_v1 = vadd.f32 %v263_v59, %v177_v63 }
 0x14f   :  { %v182_v3 = vsel %vm181_vm2, %v263_v59, %v178_v1 }
 0x150   :  { %v187_v4 = vsel %vm184_vm3, %v186_v2, %v182_v3 }
 0x151   :  { %225 = vmatmul.f32.vlgmr.msra.gmra.mxu2 %v187_v4 }
 0x1d4   :  { %v226_v6 = vpop.f32.mrf.mxu2 }
 0x1d5   :  { %v227_v7 = vadd.f32 %v259_v5, %v226_v6 }
 0x1d7   :  { %229 = vst [vmem:[#allocation10] sm:$0xff] %v227_v7 }
 0x1d8   :  { %240 = dma.vmem_to_hbm [thread:$0]  %s236_s24, 128, %s238_s27, [#allocation4]  }
 0x1d9   :  { %390 = dma.done.wait [#allocation4], 128  }
 0x1da   :  { %391 = vsyncadd [#allocation4], 4294967168 }
 0x1db   :  { %245 = vsyncpa [#allocation3], 1 }
 0x1dc   :  { %246 = vsyncpa [#allocation6], 1 }
 0x1dd   :  { %247 = vsyncpa [#allocation9], 1 }
 0x1de   :  { %248 = vsyncpa [#allocation4], 1 }

</bundles_post_ra>
